<compile_context>
chip_gen: v7x
topology: tpu7x:2x2x1
jax: 0.10.0
libtpu: 0.0.40
codegen_flags: <defaults>
</compile_context>

<pallas_src>
import functools

import jax
import jax.numpy as jnp
from jax.experimental import pallas as pl
from jax.experimental.pallas import tpu as pltpu


# --------------------------------------------------------------------------------------
# VMEM sizing helpers (generation aware)
# --------------------------------------------------------------------------------------
def _vmem_limit_bytes():
    """Scoped-VMEM limit derived from the actual chip (v7x: 64 MiB, v5e/v6e: 128 MiB)."""
    cap = 64 * 1024 * 1024                      # conservative default if the query fails
    try:
        info = pltpu.get_tpu_info()
        c = getattr(info, "vmem_capacity_bytes", None)
        if c:
            cap = int(c)
    except Exception:
        pass
    return int(min(cap * 0.7, 100 * 1024 * 1024))


def _fused_bytes(C, H, W, io_b, od_b):
    """Estimated VMEM for the fused whole-image path (double-buffered blocks + temps)."""
    S = H * W
    blocks = 3 * 2 * C * S * io_b                   # x, r, out whole-image blocks (x2 buffers)
    consts = 4 * S * (H + W) * od_b                 # eht+ewt+eh0+ew0 (x2 buffers)
    interm = 4 * C * S * 4 + 2 * C * S * od_b       # xs / wei / low-precision temporaries
    return blocks + consts + interm + (1 << 20)     # +1 MiB slack (weights, padding)


def _tiled_bytes(C, W, TH, io_b, od_b):
    """Estimated VMEM for one step of the tiled apply kernel."""
    TS = TH * W
    blocks = 3 * 2 * C * TS * io_b
    consts = 2 * TS * (2 * TH + W) * od_b           # eht + eh0 + ew0 (x2 buffers)
    interm = 4 * C * TS * 4 + 2 * C * TS * od_b
    return blocks + consts + interm + (1 << 20)


def _choose_rows_per_tile(C, H, W, io_b, od_b, budget):
    """Largest rows-per-tile TH dividing H with lane-dense TS=TH*W that fits the budget."""
    S = H * W
    best = None
    for th in range(1, H + 1):
        if H % th:
            continue
        ts = th * W
        if ts != S and ts % 128 != 0:
            continue
        if _tiled_bytes(C, W, th, io_b, od_b) <= budget:
            best = th
    if best is not None:
        return best
    for th in range(1, H + 1):                      # graceful fallback: smallest lane-dense tile
        if H % th == 0 and ((th * W) % 128 == 0 or th * W == S):
            return th
    return H


# --------------------------------------------------------------------------------------
# Fused single-pass kernel (grid = (N,), whole-image blocks): 3 HBM passes total
# --------------------------------------------------------------------------------------
def _fused_kernel(x_ref, r_ref, eht_ref, ewt_ref, eh0_ref, ew0_ref,
                  w1_ref, b1_ref, w2_ref, b2_ref, w3_ref, b3_ref, o_ref,
                  *, inv_h, inv_w):
    od = eht_ref.dtype
    x = x_ref[0].astype(jnp.float32)                                   # (C, S)
    r = r_ref[0].astype(jnp.float32)
    xs = x + r
    xs_lp = xs.astype(od)
    # Directional mean pools on the MXU (exact 0/1 one-hots; 1/H, 1/W applied in f32 after).
    xh = jnp.dot(xs_lp, eht_ref[...], preferred_element_type=jnp.float32) * inv_w   # (C, H)
    xw = jnp.dot(xs_lp, ewt_ref[...], preferred_element_type=jnp.float32) * inv_h   # (C, W)
    # conv1 (1x1, BN + bias folded) + h_swish; 1x1 conv on the concat == applied per branch.
    yh = jnp.dot(w1_ref[...], xh, preferred_element_type=jnp.float32) + b1_ref[...]
    yh = yh * (jnp.clip(yh + 3.0, 0.0, 6.0) * (1.0 / 6.0))
    yw = jnp.dot(w1_ref[...], xw, preferred_element_type=jnp.float32) + b1_ref[...]
    yw = yw * (jnp.clip(yw + 3.0, 0.0, 6.0) * (1.0 / 6.0))
    ah = jax.nn.sigmoid(jnp.dot(w2_ref[...], yh, preferred_element_type=jnp.float32)
                        + b2_ref[...])                                  # (oup, H)
    aw = jax.nn.sigmoid(jnp.dot(w3_ref[...], yw, preferred_element_type=jnp.float32)
                        + b3_ref[...])                                  # (oup, W)
    # Broadcast a_h (per-row) / a_w (per-column) over (C, S) on the otherwise-idle MXU.
    wei = (jnp.dot(ah.astype(od), eh0_ref[...], preferred_element_type=jnp.float32) *
           jnp.dot(aw.astype(od), ew0_ref[...], preferred_element_type=jnp.float32))
    # 2*xs*wei + 2*r*(1-wei) == 2*(r + x*wei)
    o_ref[0] = (2.0 * (r + x * wei)).astype(o_ref.dtype)


# --------------------------------------------------------------------------------------
# Tiled fallback, pass 1: accumulate H-direction pooled sums -> (N, C, W)
# --------------------------------------------------------------------------------------
def _pool_w_kernel(x_ref, r_ref, ewt_ref, xw_ref):
    t = pl.program_id(1)

    @pl.when(t == 0)
    def _():
        xw_ref[...] = jnp.zeros_like(xw_ref)

    xs = (x_ref[0].astype(jnp.float32) + r_ref[0].astype(jnp.float32)).astype(ewt_ref.dtype)
    xw_ref[0] += jnp.dot(xs, ewt_ref[...], preferred_element_type=jnp.float32)   # (C, W) sums


# --------------------------------------------------------------------------------------
# Tiled fallback, pass 2: per-tile a_h + broadcast + apply (lane-dense stores)
# --------------------------------------------------------------------------------------
def _apply_kernel(x_ref, r_ref, aw_ref, eht_ref, eh0_ref, ew0_ref,
                  w1_ref, b1_ref, w2_ref, b2_ref, o_ref, *, inv_w):
    od = eht_ref.dtype
    x = x_ref[0].astype(jnp.float32)                                   # (C, TS)
    r = r_ref[0].astype(jnp.float32)
    xs = x + r
    # W-direction mean pool for this tile's TH rows (exact: the 1x1 convs are per-position).
    xh = jnp.dot(xs.astype(od), eht_ref[...], preferred_element_type=jnp.float32) * inv_w   # (C, TH)
    y = jnp.dot(w1_ref[...], xh, preferred_element_type=jnp.float32) + b1_ref[...]
    y = y * (jnp.clip(y + 3.0, 0.0, 6.0) * (1.0 / 6.0))                # h_swish
    ah = jax.nn.sigmoid(jnp.dot(w2_ref[...], y, preferred_element_type=jnp.float32)
                        + b2_ref[...])                                  # (oup, TH)
    wei = (jnp.dot(ah.astype(od), eh0_ref[...], preferred_element_type=jnp.float32) *
           jnp.dot(aw_ref[0], ew0_ref[...], preferred_element_type=jnp.float32))   # (C, TS)
    o_ref[0] = (2.0 * (r + x * wei)).astype(o_ref.dtype)


# --------------------------------------------------------------------------------------
# Wrapper
# --------------------------------------------------------------------------------------
def coord_att(x, residual, params, *, onehot_dtype=None, rows_per_tile=None, out_dtype=None):
    N, C, H, W = x.shape
    assert residual.shape == x.shape, \
        "residual must already match x's spatial size (bilinear resize is then an identity)"
    S = H * W

    io_dtype = jnp.result_type(x.dtype, residual.dtype)
    if out_dtype is None:
        out_dtype = io_dtype
    # One-hot matmul dtype: match the activation dtype by default (exact for f32 I/O);
    # pass jnp.bfloat16 explicitly to keep the MXU in its fast regime for wide images.
    od = jnp.dtype(onehot_dtype) if onehot_dtype is not None else jnp.dtype(io_dtype)
    io_b = jnp.dtype(io_dtype).itemsize
    od_b = od.itemsize
    out_b = jnp.dtype(out_dtype).itemsize

    xf = x.reshape(N, C, S)
    rf = residual.reshape(N, C, S)
    if xf.dtype != io_dtype:
        xf = xf.astype(io_dtype)
    if rf.dtype != io_dtype:
        rf = rf.astype(io_dtype)

    # Fold BN (inference, running stats) and conv1 bias:
    #   bn_s*(w1@p + b1) + bn_b == (bn_s*w1)@p + (bn_s*b1 + bn_b)
    w1_eff = (params["bn_scale"] * params["w1"]).astype(jnp.float32)                        # (mip, C)
    b1_eff = (params["bn_scale"] * params["b1"] + params["bn_shift"]).astype(jnp.float32)   # (mip, 1)
    mip = w1_eff.shape[0]
    w2 = params["w2"].astype(jnp.float32); b2 = params["b2"].astype(jnp.float32)
    w3 = params["w3"].astype(jnp.float32); b3 = params["b3"].astype(jnp.float32)
    oup = w2.shape[0]
    assert oup == C, "oup must equal inp for the final broadcasted product"

    vmem_limit = _vmem_limit_bytes()
    budget = int(vmem_limit * 0.85)
    use_fused = rows_per_tile is None and _fused_bytes(C, H, W, io_b, od_b) <= budget

    # ------------------------------ fused single pass ---------------------------------
    if use_fused:
        j = jnp.arange(S)
        eh0 = (j[None, :] // W == jnp.arange(H)[:, None]).astype(od)   # (H, S)
        ew0 = (j[None, :] % W == jnp.arange(W)[:, None]).astype(od)    # (W, S)
        eht = eh0.T                                                    # (S, H)
        ewt = ew0.T                                                    # (S, W)

        cost = pl.CostEstimate(
            flops=int(N * (4 * C * S * (H + W) + 4 * mip * (C + oup) * (H + W) + 10 * C * S)),
            transcendentals=int(N * oup * (H + W)),
            bytes_accessed=int(N * C * S * (2 * io_b + out_b) + 2 * S * (H + W) * od_b))

        out = pl.pallas_call(
            functools.partial(_fused_kernel, inv_h=1.0 / H, inv_w=1.0 / W),
            out_shape=jax.ShapeDtypeStruct((N, C, S), out_dtype),
            grid_spec=pltpu.PrefetchScalarGridSpec(
                num_scalar_prefetch=0,
                grid=(N,),
                in_specs=[
                    pl.BlockSpec((1, C, S), lambda n: (n, 0, 0)),      # x
                    pl.BlockSpec((1, C, S), lambda n: (n, 0, 0)),      # residual
                    pl.BlockSpec((S, H), lambda n: (0, 0)),            # eht (constant)
                    pl.BlockSpec((S, W), lambda n: (0, 0)),            # ewt (constant)
                    pl.BlockSpec((H, S), lambda n: (0, 0)),            # eh0 (constant)
                    pl.BlockSpec((W, S), lambda n: (0, 0)),            # ew0 (constant)
                    pl.BlockSpec((mip, C), lambda n: (0, 0)),          # w1_eff
                    pl.BlockSpec((mip, 1), lambda n: (0, 0)),          # b1_eff
                    pl.BlockSpec((oup, mip), lambda n: (0, 0)),        # w2
                    pl.BlockSpec((oup, 1), lambda n: (0, 0)),          # b2
                    pl.BlockSpec((oup, mip), lambda n: (0, 0)),        # w3
                    pl.BlockSpec((oup, 1), lambda n: (0, 0)),          # b3
                ],
                out_specs=pl.BlockSpec((1, C, S), lambda n: (n, 0, 0)),
            ),
            compiler_params=pltpu.CompilerParams(
                dimension_semantics=("parallel",),
                vmem_limit_bytes=vmem_limit),
            cost_estimate=cost,
        )(xf, rf, eht, ewt, eh0, ew0, w1_eff, b1_eff, w2, b2, w3, b3)
        return out.reshape(N, C, H, W)

    # ------------------------------ tiled two-pass fallback ---------------------------
    TH = rows_per_tile if rows_per_tile is not None \
        else _choose_rows_per_tile(C, H, W, io_b, od_b, budget)
    assert H % TH == 0, "rows_per_tile must divide H"
    TS = TH * W
    assert TS == S or TS % 128 == 0, \
        "tile must be lane-dense (multiple of 128 columns) or the full image"
    n_tiles = H // TH

    j = jnp.arange(TS)
    eh0 = (j[None, :] // W == jnp.arange(TH)[:, None]).astype(od)      # (TH, TS)
    ew0 = (j[None, :] % W == jnp.arange(W)[:, None]).astype(od)        # (W,  TS)
    eht = eh0.T                                                        # (TS, TH)
    ewt = ew0.T                                                        # (TS, W)

    # Pass 1: accumulate H-direction pooled sums (tiny output, reduction axis last).
    cost_a = pl.CostEstimate(
        flops=int(N * 2 * C * S * W),
        transcendentals=0,
        bytes_accessed=int(N * C * S * 2 * io_b + N * C * W * 4 + TS * W * od_b))
    xw_sums = pl.pallas_call(
        _pool_w_kernel,
        out_shape=jax.ShapeDtypeStruct((N, C, W), jnp.float32),
        grid_spec=pltpu.PrefetchScalarGridSpec(
            num_scalar_prefetch=0,
            grid=(N, n_tiles),
            in_specs=[
                pl.BlockSpec((1, C, TS), lambda n, t: (n, 0, t)),
                pl.BlockSpec((1, C, TS), lambda n, t: (n, 0, t)),
                pl.BlockSpec((TS, W), lambda n, t: (0, 0)),
            ],
            out_specs=pl.BlockSpec((1, C, W), lambda n, t: (n, 0, 0)),
        ),
        compiler_params=pltpu.CompilerParams(
            dimension_semantics=("parallel", "arbitrary"),
            vmem_limit_bytes=vmem_limit),
        cost_estimate=cost_a,
    )(xf, rf, ewt)

    # Tiny a_w epilogue in plain JAX (keeps the pooling kernel trivially simple/parallel).
    x_w = xw_sums * (1.0 / H)                                          # (N, C, W) mean over H
    y_w = jnp.einsum("mc,ncw->nmw", w1_eff, x_w) + b1_eff[None]
    y_w = y_w * (jnp.clip(y_w + 3.0, 0.0, 6.0) * (1.0 / 6.0))
    a_w = jax.nn.sigmoid(jnp.einsum("om,nmw->now", w3, y_w) + b3[None]).astype(od)   # (N, oup, W)

    # Pass 2: per-tile a_h + broadcast + apply.
    cost_b = pl.CostEstimate(
        flops=int(N * (4 * C * S * TH + 2 * C * S * W + 10 * C * S)),
        transcendentals=int(N * oup * H),
        bytes_accessed=int(N * C * S * (2 * io_b + out_b)))
    out = pl.pallas_call(
        functools.partial(_apply_kernel, inv_w=1.0 / W),
        out_shape=jax.ShapeDtypeStruct((N, C, S), out_dtype),
        grid_spec=pltpu.PrefetchScalarGridSpec(
            num_scalar_prefetch=0,
            grid=(N, n_tiles),
            in_specs=[
                pl.BlockSpec((1, C, TS), lambda n, t: (n, 0, t)),      # x tile
                pl.BlockSpec((1, C, TS), lambda n, t: (n, 0, t)),      # residual tile
                pl.BlockSpec((1, oup, W), lambda n, t: (n, 0, 0)),     # a_w (per image)
                pl.BlockSpec((TS, TH), lambda n, t: (0, 0)),           # eht (constant)
                pl.BlockSpec((TH, TS), lambda n, t: (0, 0)),           # eh0 (constant)
                pl.BlockSpec((W, TS), lambda n, t: (0, 0)),            # ew0 (constant)
                pl.BlockSpec((mip, C), lambda n, t: (0, 0)),           # w1_eff
                pl.BlockSpec((mip, 1), lambda n, t: (0, 0)),           # b1_eff
                pl.BlockSpec((oup, mip), lambda n, t: (0, 0)),         # w2
                pl.BlockSpec((oup, 1), lambda n, t: (0, 0)),           # b2
            ],
            out_specs=pl.BlockSpec((1, C, TS), lambda n, t: (n, 0, t)),
        ),
        compiler_params=pltpu.CompilerParams(
            dimension_semantics=("parallel", "parallel"),
            vmem_limit_bytes=vmem_limit),
        cost_estimate=cost_b,
    )(xf, rf, a_w, eht, eh0, ew0, w1_eff, b1_eff, w2, b2)

    return out.reshape(N, C, H, W)


# --------------------------------------------------------------------------------------
# Pure-JAX reference mirroring the PyTorch forward
# --------------------------------------------------------------------------------------
def coord_att_ref(x, residual, p):
    xs = x + residual
    H = x.shape[2]
    x_h = jnp.mean(xs, axis=3)                          # (N, C, H)
    x_w = jnp.mean(xs, axis=2)                          # (N, C, W)
    y = jnp.concatenate([x_h, x_w], axis=2)             # (N, C, H+W)
    y = jnp.einsum("mc,nch->nmh", p["w1"], y) + p["b1"][None]
    y = y * p["bn_scale"][None] + p["bn_shift"][None]
    y = y * jnp.clip(y + 3.0, 0.0, 6.0) / 6.0
    y_h, y_w = y[:, :, :H], y[:, :, H:]
    a_h = jax.nn.sigmoid(jnp.einsum("om,nmh->noh", p["w2"], y_h) + p["b2"][None])
    a_w = jax.nn.sigmoid(jnp.einsum("om,nmw->now", p["w3"], y_w) + p["b3"][None])
    wei = a_h[:, :, :, None] * a_w[:, :, None, :]
    return 2.0 * xs * wei + 2.0 * residual * (1.0 - wei)


def make_params(key, inp, oup, groups=32):
    mip = max(8, inp // groups)
    ks = jax.random.split(key, 10)
    eps = 1e-5
    gamma = 1.0 + 0.1 * jax.random.normal(ks[6], (mip, 1), jnp.float32)
    beta = 0.1 * jax.random.normal(ks[7], (mip, 1), jnp.float32)
    rmean = 0.1 * jax.random.normal(ks[8], (mip, 1), jnp.float32)
    rvar = 0.5 + jnp.abs(jax.random.normal(ks[9], (mip, 1), jnp.float32))
    inv_std = 1.0 / jnp.sqrt(rvar + eps)
    return {
        "w1": 0.2 * jax.random.normal(ks[0], (mip, inp), jnp.float32),
        "b1": 0.1 * jax.random.normal(ks[1], (mip, 1), jnp.float32),
        "w2": 0.2 * jax.random.normal(ks[2], (oup, mip), jnp.float32),
        "b2": 0.1 * jax.random.normal(ks[3], (oup, 1), jnp.float32),
        "w3": 0.2 * jax.random.normal(ks[4], (oup, mip), jnp.float32),
        "b3": 0.1 * jax.random.normal(ks[5], (oup, 1), jnp.float32),
        "bn_scale": gamma * inv_std,
        "bn_shift": beta - rmean * gamma * inv_std,
    }


if __name__ == "__main__":
    N, C, H, W = 2, 4, 16, 16          # inp = oup = 4, groups = 32 -> mip = 8
    key = jax.random.PRNGKey(0)
    kx, kr, kp = jax.random.split(key, 3)
    x = jax.random.normal(kx, (N, C, H, W), jnp.float32)
    residual = jax.random.normal(kr, (N, C, H, W), jnp.float32)
    params = make_params(kp, inp=C, oup=C, groups=32)

    ref = coord_att_ref(x, residual, params)

    # 1) Default: fused single-pass kernel, f32 I/O -> exact f32 one-hot matmuls.
    out = jax.block_until_ready(coord_att(x, residual, params))
    assert out.shape == (N, C, H, W)
    assert jnp.allclose(out, ref, rtol=2e-3, atol=2e-3), float(jnp.max(jnp.abs(out - ref)))

    # 2) bf16 one-hot/broadcast matmuls on f32 I/O (v5e MXU-friendly option; reduced precision).
    out_lp = jax.block_until_ready(coord_att(x, residual, params, onehot_dtype=jnp.bfloat16))
    assert jnp.allclose(out_lp, ref, rtol=1e-1, atol=1e-1), float(jnp.max(jnp.abs(out_lp - ref)))

    # 3) Tiled two-pass fallback (TS = 8*16 = 128 per tile): exercises cross-tile pooling
    #    accumulation and the plain-JAX a_w epilogue.
    out_tiled = jax.block_until_ready(coord_att(x, residual, params, rows_per_tile=8))
    assert jnp.allclose(out_tiled, ref, rtol=2e-3, atol=2e-3), \
        float(jnp.max(jnp.abs(out_tiled - ref)))

    # 4) bf16 activations end-to-end (halved HBM traffic); compare against the reference
    #    evaluated on the bf16-rounded inputs, loose tolerance for bf16 quantization.
    xb = x.astype(jnp.bfloat16)
    rb = residual.astype(jnp.bfloat16)
    ref_b = coord_att_ref(xb.astype(jnp.float32), rb.astype(jnp.float32), params)
    out_b = jax.block_until_ready(coord_att(xb, rb, params))
    assert out_b.dtype == jnp.bfloat16
    assert jnp.allclose(out_b.astype(jnp.float32), ref_b, rtol=5e-2, atol=1e-1), \
        float(jnp.max(jnp.abs(out_b.astype(jnp.float32) - ref_b)))

    print("KERNEL_OK")
</pallas_src>

<mosaic_0001>
module attributes {stable_mosaic.version = 11 : i64} {
  func.func @_fused_kernel(%arg0: i32, %arg1: memref<1x4x256xf32, #tpu.memory_space<vmem>>, %arg2: memref<1x4x256xf32, #tpu.memory_space<vmem>>, %arg3: memref<256x16xf32, #tpu.memory_space<vmem>>, %arg4: memref<256x16xf32, #tpu.memory_space<vmem>>, %arg5: memref<16x256xf32, #tpu.memory_space<vmem>>, %arg6: memref<16x256xf32, #tpu.memory_space<vmem>>, %arg7: memref<8x4xf32, #tpu.memory_space<vmem>>, %arg8: memref<8x1xf32, #tpu.memory_space<vmem>>, %arg9: memref<4x8xf32, #tpu.memory_space<vmem>>, %arg10: memref<4x1xf32, #tpu.memory_space<vmem>>, %arg11: memref<4x8xf32, #tpu.memory_space<vmem>>, %arg12: memref<4x1xf32, #tpu.memory_space<vmem>>, %arg13: memref<1x4x256xf32, #tpu.memory_space<vmem>>) attributes {dimension_semantics = [#tpu.dimension_semantics<parallel>], iteration_bounds = array<i64: 2>, scalar_prefetch = 0 : i64, scratch_operands = 0 : i64, tpu.core_type = #tpu.core_type<tc>, window_params = [{transform_indices = @transform_0, window_bounds = array<i64: 1, 4, 256>}, {transform_indices = @transform_1, window_bounds = array<i64: 1, 4, 256>}, {pipeline_mode = #tpu.pipeline_mode<synchronous>, transform_indices = @transform_2, window_bounds = array<i64: 256, 16>}, {pipeline_mode = #tpu.pipeline_mode<synchronous>, transform_indices = @transform_3, window_bounds = array<i64: 256, 16>}, {pipeline_mode = #tpu.pipeline_mode<synchronous>, transform_indices = @transform_4, window_bounds = array<i64: 16, 256>}, {pipeline_mode = #tpu.pipeline_mode<synchronous>, transform_indices = @transform_5, window_bounds = array<i64: 16, 256>}, {pipeline_mode = #tpu.pipeline_mode<synchronous>, transform_indices = @transform_6, window_bounds = array<i64: 8, 4>}, {pipeline_mode = #tpu.pipeline_mode<synchronous>, transform_indices = @transform_7, window_bounds = array<i64: 8, 1>}, {pipeline_mode = #tpu.pipeline_mode<synchronous>, transform_indices = @transform_8, window_bounds = array<i64: 4, 8>}, {pipeline_mode = #tpu.pipeline_mode<synchronous>, transform_indices = @transform_9, window_bounds = array<i64: 4, 1>}, {pipeline_mode = #tpu.pipeline_mode<synchronous>, transform_indices = @transform_10, window_bounds = array<i64: 4, 8>}, {pipeline_mode = #tpu.pipeline_mode<synchronous>, transform_indices = @transform_11, window_bounds = array<i64: 4, 1>}, {transform_indices = @transform_12, window_bounds = array<i64: 1, 4, 256>}]} {
    %c0 = arith.constant 0 : index
    %c0_0 = arith.constant 0 : index
    %c0_1 = arith.constant 0 : index
    %0 = vector.load %arg1[%c0, %c0_0, %c0_1] : memref<1x4x256xf32, #tpu.memory_space<vmem>>, vector<1x4x256xf32>
    %1 = vector.shape_cast %0 : vector<1x4x256xf32> to vector<4x256xf32>
    %c0_2 = arith.constant 0 : index
    %c0_3 = arith.constant 0 : index
    %c0_4 = arith.constant 0 : index
    %2 = vector.load %arg2[%c0_2, %c0_3, %c0_4] : memref<1x4x256xf32, #tpu.memory_space<vmem>>, vector<1x4x256xf32>
    %3 = vector.shape_cast %2 : vector<1x4x256xf32> to vector<4x256xf32>
    %4 = arith.addf %1, %3 : vector<4x256xf32>
    %c0_5 = arith.constant 0 : index
    %c0_6 = arith.constant 0 : index
    %5 = vector.load %arg3[%c0_5, %c0_6] : memref<256x16xf32, #tpu.memory_space<vmem>>, vector<256x16xf32>
    %cst = arith.constant dense<0.000000e+00> : vector<4x16xf32>
    %6 = tpu.matmul %4, %5, %cst {dimension_numbers = #tpu.dot_dimension_numbers<[1], [0], [0], [1], [0, 0, 1, 1], [], []>} : vector<4x256xf32>, vector<256x16xf32>, vector<4x16xf32> -> vector<4x16xf32>
    %cst_7 = arith.constant 6.250000e-02 : f32
    %7 = vector.broadcast %cst_7 : f32 to vector<4x16xf32>
    %8 = arith.mulf %6, %7 : vector<4x16xf32>
    %c0_8 = arith.constant 0 : index
    %c0_9 = arith.constant 0 : index
    %9 = vector.load %arg4[%c0_8, %c0_9] : memref<256x16xf32, #tpu.memory_space<vmem>>, vector<256x16xf32>
    %cst_10 = arith.constant dense<0.000000e+00> : vector<4x16xf32>
    %10 = tpu.matmul %4, %9, %cst_10 {dimension_numbers = #tpu.dot_dimension_numbers<[1], [0], [0], [1], [0, 0, 1, 1], [], []>} : vector<4x256xf32>, vector<256x16xf32>, vector<4x16xf32> -> vector<4x16xf32>
    %cst_11 = arith.constant 6.250000e-02 : f32
    %11 = vector.broadcast %cst_11 : f32 to vector<4x16xf32>
    %12 = arith.mulf %10, %11 : vector<4x16xf32>
    %c0_12 = arith.constant 0 : index
    %c0_13 = arith.constant 0 : index
    %13 = vector.load %arg7[%c0_12, %c0_13] : memref<8x4xf32, #tpu.memory_space<vmem>>, vector<8x4xf32>
    %cst_14 = arith.constant dense<0.000000e+00> : vector<8x16xf32>
    %14 = tpu.matmul %13, %8, %cst_14 {dimension_numbers = #tpu.dot_dimension_numbers<[1], [0], [0], [1], [0, 0, 1, 1], [], []>} : vector<8x4xf32>, vector<4x16xf32>, vector<8x16xf32> -> vector<8x16xf32>
    %c0_15 = arith.constant 0 : index
    %c0_16 = arith.constant 0 : index
    %15 = vector.load %arg8[%c0_15, %c0_16] : memref<8x1xf32, #tpu.memory_space<vmem>>, vector<8x1xf32>
    %16 = vector.broadcast %15 : vector<8x1xf32> to vector<8x16xf32>
    %17 = arith.addf %14, %16 : vector<8x16xf32>
    %cst_17 = arith.constant 3.000000e+00 : f32
    %18 = vector.broadcast %cst_17 : f32 to vector<8x16xf32>
    %19 = arith.addf %17, %18 : vector<8x16xf32>
    %cst_18 = arith.constant 0.000000e+00 : f32
    %cst_19 = arith.constant 6.000000e+00 : f32
    %20 = vector.broadcast %cst_18 : f32 to vector<8x16xf32>
    %21 = arith.maximumf %20, %19 : vector<8x16xf32>
    %22 = vector.broadcast %cst_19 : f32 to vector<8x16xf32>
    %23 = arith.minimumf %22, %21 : vector<8x16xf32>
    %cst_20 = arith.constant 0.166666672 : f32
    %24 = vector.broadcast %cst_20 : f32 to vector<8x16xf32>
    %25 = arith.mulf %23, %24 : vector<8x16xf32>
    %26 = arith.mulf %17, %25 : vector<8x16xf32>
    %c0_21 = arith.constant 0 : index
    %c0_22 = arith.constant 0 : index
    %27 = vector.load %arg7[%c0_21, %c0_22] : memref<8x4xf32, #tpu.memory_space<vmem>>, vector<8x4xf32>
    %cst_23 = arith.constant dense<0.000000e+00> : vector<8x16xf32>
    %28 = tpu.matmul %27, %12, %cst_23 {dimension_numbers = #tpu.dot_dimension_numbers<[1], [0], [0], [1], [0, 0, 1, 1], [], []>} : vector<8x4xf32>, vector<4x16xf32>, vector<8x16xf32> -> vector<8x16xf32>
    %c0_24 = arith.constant 0 : index
    %c0_25 = arith.constant 0 : index
    %29 = vector.load %arg8[%c0_24, %c0_25] : memref<8x1xf32, #tpu.memory_space<vmem>>, vector<8x1xf32>
    %30 = vector.broadcast %29 : vector<8x1xf32> to vector<8x16xf32>
    %31 = arith.addf %28, %30 : vector<8x16xf32>
    %cst_26 = arith.constant 3.000000e+00 : f32
    %32 = vector.broadcast %cst_26 : f32 to vector<8x16xf32>
    %33 = arith.addf %31, %32 : vector<8x16xf32>
    %cst_27 = arith.constant 0.000000e+00 : f32
    %cst_28 = arith.constant 6.000000e+00 : f32
    %34 = vector.broadcast %cst_27 : f32 to vector<8x16xf32>
    %35 = arith.maximumf %34, %33 : vector<8x16xf32>
    %36 = vector.broadcast %cst_28 : f32 to vector<8x16xf32>
    %37 = arith.minimumf %36, %35 : vector<8x16xf32>
    %cst_29 = arith.constant 0.166666672 : f32
    %38 = vector.broadcast %cst_29 : f32 to vector<8x16xf32>
    %39 = arith.mulf %37, %38 : vector<8x16xf32>
    %40 = arith.mulf %31, %39 : vector<8x16xf32>
    %c0_30 = arith.constant 0 : index
    %c0_31 = arith.constant 0 : index
    %41 = vector.load %arg9[%c0_30, %c0_31] : memref<4x8xf32, #tpu.memory_space<vmem>>, vector<4x8xf32>
    %cst_32 = arith.constant dense<0.000000e+00> : vector<4x16xf32>
    %42 = tpu.matmul %41, %26, %cst_32 {dimension_numbers = #tpu.dot_dimension_numbers<[1], [0], [0], [1], [0, 0, 1, 1], [], []>} : vector<4x8xf32>, vector<8x16xf32>, vector<4x16xf32> -> vector<4x16xf32>
    %c0_33 = arith.constant 0 : index
    %c0_34 = arith.constant 0 : index
    %43 = vector.load %arg10[%c0_33, %c0_34] : memref<4x1xf32, #tpu.memory_space<vmem>>, vector<4x1xf32>
    %44 = vector.broadcast %43 : vector<4x1xf32> to vector<4x16xf32>
    %45 = arith.addf %42, %44 : vector<4x16xf32>
    %46 = arith.negf %45 : vector<4x16xf32>
    %47 = math.exp %46 : vector<4x16xf32>
    %cst_35 = arith.constant 1.000000e+00 : f32
    %48 = vector.broadcast %cst_35 : f32 to vector<4x16xf32>
    %49 = arith.addf %48, %47 : vector<4x16xf32>
    %50 = arith.divf %48, %49 : vector<4x16xf32>
    %c0_36 = arith.constant 0 : index
    %c0_37 = arith.constant 0 : index
    %51 = vector.load %arg11[%c0_36, %c0_37] : memref<4x8xf32, #tpu.memory_space<vmem>>, vector<4x8xf32>
    %cst_38 = arith.constant dense<0.000000e+00> : vector<4x16xf32>
    %52 = tpu.matmul %51, %40, %cst_38 {dimension_numbers = #tpu.dot_dimension_numbers<[1], [0], [0], [1], [0, 0, 1, 1], [], []>} : vector<4x8xf32>, vector<8x16xf32>, vector<4x16xf32> -> vector<4x16xf32>
    %c0_39 = arith.constant 0 : index
    %c0_40 = arith.constant 0 : index
    %53 = vector.load %arg12[%c0_39, %c0_40] : memref<4x1xf32, #tpu.memory_space<vmem>>, vector<4x1xf32>
    %54 = vector.broadcast %53 : vector<4x1xf32> to vector<4x16xf32>
    %55 = arith.addf %52, %54 : vector<4x16xf32>
    %56 = arith.negf %55 : vector<4x16xf32>
    %57 = math.exp %56 : vector<4x16xf32>
    %cst_41 = arith.constant 1.000000e+00 : f32
    %58 = vector.broadcast %cst_41 : f32 to vector<4x16xf32>
    %59 = arith.addf %58, %57 : vector<4x16xf32>
    %60 = arith.divf %58, %59 : vector<4x16xf32>
    %c0_42 = arith.constant 0 : index
    %c0_43 = arith.constant 0 : index
    %61 = vector.load %arg5[%c0_42, %c0_43] : memref<16x256xf32, #tpu.memory_space<vmem>>, vector<16x256xf32>
    %cst_44 = arith.constant dense<0.000000e+00> : vector<4x256xf32>
    %62 = tpu.matmul %50, %61, %cst_44 {dimension_numbers = #tpu.dot_dimension_numbers<[1], [0], [0], [1], [0, 0, 1, 1], [], []>} : vector<4x16xf32>, vector<16x256xf32>, vector<4x256xf32> -> vector<4x256xf32>
    %c0_45 = arith.constant 0 : index
    %c0_46 = arith.constant 0 : index
    %63 = vector.load %arg6[%c0_45, %c0_46] : memref<16x256xf32, #tpu.memory_space<vmem>>, vector<16x256xf32>
    %cst_47 = arith.constant dense<0.000000e+00> : vector<4x256xf32>
    %64 = tpu.matmul %60, %63, %cst_47 {dimension_numbers = #tpu.dot_dimension_numbers<[1], [0], [0], [1], [0, 0, 1, 1], [], []>} : vector<4x16xf32>, vector<16x256xf32>, vector<4x256xf32> -> vector<4x256xf32>
    %65 = arith.mulf %62, %64 : vector<4x256xf32>
    %66 = arith.mulf %1, %65 : vector<4x256xf32>
    %67 = arith.addf %3, %66 : vector<4x256xf32>
    %cst_48 = arith.constant 2.000000e+00 : f32
    %68 = vector.broadcast %cst_48 : f32 to vector<4x256xf32>
    %69 = arith.mulf %68, %67 : vector<4x256xf32>
    %c0_49 = arith.constant 0 : index
    %c0_50 = arith.constant 0 : index
    %c0_51 = arith.constant 0 : index
    %70 = vector.load %arg13[%c0_49, %c0_50, %c0_51] : memref<1x4x256xf32, #tpu.memory_space<vmem>>, vector<1x4x256xf32>
    %71 = vector.shape_cast %70 : vector<1x4x256xf32> to vector<4x256xf32>
    %72 = vector.shape_cast %69 : vector<4x256xf32> to vector<1x4x256xf32>
    tpu.vector_store %arg13[%c0_49, %c0_50, %c0_51], %72 {strides = array<i32>} : memref<1x4x256xf32, #tpu.memory_space<vmem>>, vector<1x4x256xf32>,
    return
  }
  func.func @transform_0(%arg0: i32) -> (i32, i32, i32) {
    %c0_i32 = arith.constant 0 : i32
    %c0_i32_0 = arith.constant 0 : i32
    %c0_i32_1 = arith.constant 0 : i32
    return %arg0, %c0_i32, %c0_i32_0 : i32, i32, i32
  }
  func.func @transform_1(%arg0: i32) -> (i32, i32, i32) {
    %c0_i32 = arith.constant 0 : i32
    %c0_i32_0 = arith.constant 0 : i32
    %c0_i32_1 = arith.constant 0 : i32
    return %arg0, %c0_i32, %c0_i32_0 : i32, i32, i32
  }
  func.func @transform_2(%arg0: i32) -> (i32, i32) {
    %c0_i32 = arith.constant 0 : i32
    %c0_i32_0 = arith.constant 0 : i32
    %c0_i32_1 = arith.constant 0 : i32
    return %c0_i32, %c0_i32_0 : i32, i32
  }
  func.func @transform_3(%arg0: i32) -> (i32, i32) {
    %c0_i32 = arith.constant 0 : i32
    %c0_i32_0 = arith.constant 0 : i32
    %c0_i32_1 = arith.constant 0 : i32
    return %c0_i32, %c0_i32_0 : i32, i32
  }
  func.func @transform_4(%arg0: i32) -> (i32, i32) {
    %c0_i32 = arith.constant 0 : i32
    %c0_i32_0 = arith.constant 0 : i32
    %c0_i32_1 = arith.constant 0 : i32
    return %c0_i32, %c0_i32_0 : i32, i32
  }
  func.func @transform_5(%arg0: i32) -> (i32, i32) {
    %c0_i32 = arith.constant 0 : i32
    %c0_i32_0 = arith.constant 0 : i32
    %c0_i32_1 = arith.constant 0 : i32
    return %c0_i32, %c0_i32_0 : i32, i32
  }
  func.func @transform_6(%arg0: i32) -> (i32, i32) {
    %c0_i32 = arith.constant 0 : i32
    %c0_i32_0 = arith.constant 0 : i32
    %c0_i32_1 = arith.constant 0 : i32
    return %c0_i32, %c0_i32_0 : i32, i32
  }
  func.func @transform_7(%arg0: i32) -> (i32, i32) {
    %c0_i32 = arith.constant 0 : i32
    %c0_i32_0 = arith.constant 0 : i32
    %c0_i32_1 = arith.constant 0 : i32
    return %c0_i32, %c0_i32_0 : i32, i32
  }
  func.func @transform_8(%arg0: i32) -> (i32, i32) {
    %c0_i32 = arith.constant 0 : i32
    %c0_i32_0 = arith.constant 0 : i32
    %c0_i32_1 = arith.constant 0 : i32
    return %c0_i32, %c0_i32_0 : i32, i32
  }
  func.func @transform_9(%arg0: i32) -> (i32, i32) {
    %c0_i32 = arith.constant 0 : i32
    %c0_i32_0 = arith.constant 0 : i32
    %c0_i32_1 = arith.constant 0 : i32
    return %c0_i32, %c0_i32_0 : i32, i32
  }
  func.func @transform_10(%arg0: i32) -> (i32, i32) {
    %c0_i32 = arith.constant 0 : i32
    %c0_i32_0 = arith.constant 0 : i32
    %c0_i32_1 = arith.constant 0 : i32
    return %c0_i32, %c0_i32_0 : i32, i32
  }
  func.func @transform_11(%arg0: i32) -> (i32, i32) {
    %c0_i32 = arith.constant 0 : i32
    %c0_i32_0 = arith.constant 0 : i32
    %c0_i32_1 = arith.constant 0 : i32
    return %c0_i32, %c0_i32_0 : i32, i32
  }
  func.func @transform_12(%arg0: i32) -> (i32, i32, i32) {
    %c0_i32 = arith.constant 0 : i32
    %c0_i32_0 = arith.constant 0 : i32
    %c0_i32_1 = arith.constant 0 : i32
    return %arg0, %c0_i32, %c0_i32_0 : i32, i32, i32
  }
}

</mosaic_0001>

<bundles_post_ra>
// kernel: tpu_custom_call.1
= control target key start
LH: loop header
LB: loop body
LE: loop exit
PB: predicated region body
PF: predicated region fallthrough
CT: control target
= control target key end

     0   :  { %17 = vsyncpa [#allocation3], 0  ;;  %s1974_s0 = inlined_call_operand.vmem [shape: f32[2,4,256], index: 0, kind: input, shape index: {}]   ;;  %s1975_s1 = inlined_call_operand.vmem [shape: f32[2,4,256], index: 1, kind: input, shape index: {}]   ;;  %s1976_s2 = inlined_call_operand.vmem [shape: f32[256,16], index: 2, kind: input, shape index: {}]   ;;  %s1977_s3 = inlined_call_operand.vmem [shape: f32[256,16], index: 3, kind: input, shape index: {}]   ;;  %s1978_s4 = inlined_call_operand.vmem [shape: f32[16,256], index: 4, kind: input, shape index: {}]   ;;  %s1979_s5 = inlined_call_operand.vmem [shape: f32[16,256], index: 5, kind: input, shape index: {}]   ;;  %s1980_s6 = inlined_call_operand.vmem [shape: f32[8,4], index: 6, kind: input, shape index: {}]   ;;  %s1981_s7 = inlined_call_operand.vmem [shape: f32[8,1], index: 7, kind: input, shape index: {}]   ;;  %s1982_s8 = inlined_call_operand.vmem [shape: f32[4,8], index: 8, kind: input, shape index: {}]   ;;  %s1983_s9 = inlined_call_operand.vmem [shape: f32[4,1], index: 9, kind: input, shape index: {}]   ;;  %s1984_s10 = inlined_call_operand.vmem [shape: f32[4,8], index: 10, kind: input, shape index: {}]   ;;  %s1985_s11 = inlined_call_operand.vmem [shape: f32[4,1], index: 11, kind: input, shape index: {}]   ;;  %s1986_s12 = inlined_call_operand.hbm [shape: f32[2,4,256], index: 12, kind: output, shape index: {}]  }
   0x1   :  { %19 = vsyncpa [#allocation3 + $0x1], 0  ;;  %s1620_s21 = smov 0   ;;  %s1622_s22 = smov 0  }
   0x2   :  { %s1624_s23 = smov 0   ;;  %s1626_s24 = smov 0  }
   0x3 LB: > { %1993 = sst [smem:[#allocation5_spill]] %s1537_s21  ;;  %s1641_s25 = sadd.s32 4294967295, %s1549_s24   ;;  %s1549_s24 = sphi %s1626_s24, %s2004_s24   ;;  %s1545_s23 = sphi %s1624_s23, %s2006_s23   ;;  %s1541_s22 = sphi %s1622_s22, %s2008_s22   ;;  %s1537_s21 = sphi %s1620_s21, %s2007_s21  }
   0x4   : > { %1994 = sst [smem:[#allocation6_spill]] %s1545_s23  ;;  %s1238_s26 = sadd.s32 4294967294, %s1549_s24  }
   0x5   : > { %1995 = sst [smem:[#allocation7_spill]] %s1549_s24  ;;  %s1645_s27 = sadd.s32 1, %s1549_s24  }
   0x6   : > { %1996 = sst [smem:[#allocation8_spill]] %s1645_s27  ;;  %s294_s28 = sadd.s32 1, %s1545_s23 }
   0x7   : > { %s291_s29 = ssub.s32 %s1549_s24, %s1645_s27  ;;  %p304_p0 = scmp.ne.s32.totalorder %s1545_s23, %s1541_s22 }
   0x8   : > { %p292_p1 = scmp.eq.s32.totalorder %s291_s29, 0  ;;  %p305_p2 = scmp.eq.s32.totalorder %s1641_s25, 1 }
   0x9   : > { %p310_p3 = scmp.ne.s32.totalorder %s1541_s22, %s1537_s21  ;;  %p311_p4 = scmp.eq.s32.totalorder %s1238_s26, 1 }
   0xa   : > { %s1656_s30 = scalar_select %p292_p1, %s1545_s23, %s294_s28  }
   0xb   : > { %p1658_p5 = por %p305_p2, %p304_p0  ;;  %p1662_p6 = por %p311_p4, %p310_p3 }
   0xc   : > { %1997 = sst [smem:[#allocation9_spill]] %s1656_s30  ;;  %p1241_p7 = scmp.ge.s32.totalorder %s1549_s24, 1 }
   0xd   : > { %s1999_s14 = scalar_select %p1662_p6, 1, 0 }
   0xe   : > { %p375_p8 = scmp.lt.s32.totalorder %s1549_s24, 3 }
   0xf   : > { %2000 = sst [smem:[#allocation10_spill]] %s1999_s14 }
  0x10   : > { %p376_p9 = pnand %p1241_p7, %p375_p8 }
  0x11   : > { %v451_v0 = vld [vmem:[%s1976_s2 + $0x80] sm:$0xff] (!%p376_p9)  ;;  %v452_v1 = vld [vmem:[%s1976_s2 + $0x88] sm:$0xff] (!%p376_p9)  ;;  %v453_v11 = vld [vmem:[%s1976_s2 + $0x90] sm:$0xff] (!%p376_p9)  ;;  %p422_p10 = scmp.lt.s32.totalorder (!%p376_p9), %s1641_s25, 1  ;;  %vm1552_vm0 = vmmov (!%p376_p9), 0   ;;  %vm655_vm1 = vcmask (!%p376_p9), 1043456  }
  0x12   : > { %379 = sbr.rel (%p376_p9) target bundleno = 974 (0x3ce), region = 68  ;;  %v557_v2 = vld [vmem:[%s1977_s3 + $0x80] sm:$0xff] (!%p376_p9)  ;;  %v1363_v3 = vpack.c.bf16 (!%p376_p9), %v452_v1, %v451_v0  ;;  %v558_v4 = vld [vmem:[%s1977_s3 + $0x88] sm:$0xff] (!%p376_p9)  ;;  %v454_v13 = vld [vmem:[%s1976_s2 + $0x98] sm:$0xff] (!%p376_p9)  ;;  %vm651_vm2 = vcmask (!%p376_p9), 31744   ;;  %vm819_vm3 = vcmask (!%p376_p9), 64512  }
  0x13   : > { %v435_v5 = vld [vmem:[%s1976_s2] sm:$0xff] (!%p376_p9)  ;;  %v436_v6 = vld [vmem:[%s1976_s2 + $0x8] sm:$0xff] (!%p376_p9)  ;;  %v1395_v7 = vpack.c.bf16 (!%p376_p9), %v558_v4, %v557_v2  ;;  %v559_v14 = vld [vmem:[%s1977_s3 + $0x90] sm:$0xff] (!%p376_p9)  ;;  %v1367_v16 = vpack.c.bf16 (!%p376_p9), %v454_v13, %v453_v11  ;;  %vm989_vm4 = vcmask (!%p376_p9), 130048   ;;  %s419_s16 = sand.u32 (!%p376_p9), 1, %s1541_s22   ;;  %s1264_s19 = sshll.u32 (!%p376_p9), %s1641_s25, 7 }
  0x14   : > { %v1365_v8 = vpack.c.bf16 (!%p376_p9), %v436_v6, %v435_v5  ;;  %v541_v9 = vld [vmem:[%s1977_s3] sm:$0xff] (!%p376_p9)  ;;  %v542_v10 = vld [vmem:[%s1977_s3 + $0x8] sm:$0xff] (!%p376_p9)  ;;  %1364 = vmatprep.subr.bf16.mxu0 (!%p376_p9), %v1363_v3  ;;  %v560_v15 = vld [vmem:[%s1977_s3 + $0x98] sm:$0xff] (!%p376_p9)  ;;  %s1242_s17 = sshll.u32 (!%p376_p9), %s419_s16, 3  ;;  %s1932_s30 = scalar_lea.hbm (!%p376_p9), %s1986_s12, %s1264_s19 }
  0x15   : > { %v1397_v12 = vpack.c.bf16 (!%p376_p9), %v542_v10, %v541_v9  ;;  %1396 = vmatprep.subr.bf16.mxu1 (!%p376_p9), %v1395_v7  ;;  %v1399_v17 = vpack.c.bf16 (!%p376_p9), %v560_v15, %v559_v14  ;;  %v437_v18 = vld [vmem:[%s1976_s2 + $0x10] sm:$0xff] (!%p376_p9)  ;;  %v438_v19 = vld [vmem:[%s1976_s2 + $0x18] sm:$0xff] (!%p376_p9)  ;;  %v455_v23 = vld [vmem:[%s1976_s2 + $0xa0] sm:$0xff] (!%p376_p9)  ;;  %s421_s26 = scalar_lea.vmem (!%p376_p9), [#allocation2], %s1242_s17  ;;  %s1153_s28 = scalar_lea.sflag (!%p376_p9), [#allocation3], %s419_s16 }
  0x16   : > { %1366 = vmatpush3.bf16.msra.mxu0 (!%p376_p9), %v1365_v8  ;;  %v543_v20 = vld [vmem:[%s1977_s3 + $0x10] sm:$0xff] (!%p376_p9)  ;;  %v1369_v21 = vpack.c.bf16 (!%p376_p9), %v438_v19, %v437_v18  ;;  %v544_v22 = vld [vmem:[%s1977_s3 + $0x18] sm:$0xff] (!%p376_p9)  ;;  %v456_v24 = vld [vmem:[%s1976_s2 + $0xa8] sm:$0xff] (!%p376_p9) }
  0x17   : > { %1398 = vmatpush3.bf16.msra.mxu1 (!%p376_p9), %v1397_v12  ;;  %1368 = vmatprep.subr.bf16.mxu0 (!%p376_p9), %v1367_v16  ;;  %v1401_v25 = vpack.c.bf16 (!%p376_p9), %v544_v22, %v543_v20  ;;  %v1371_v26 = vpack.c.bf16 (!%p376_p9), %v456_v24, %v455_v23  ;;  %v561_v27 = vld [vmem:[%s1977_s3 + $0xa0] sm:$0xff] (!%p376_p9)  ;;  %v562_v28 = vld [vmem:[%s1977_s3 + $0xa8] sm:$0xff] (!%p376_p9)  ;;  %v457_v35 = vld [vmem:[%s1976_s2 + $0xb0] sm:$0xff] (!%p376_p9) }
  0x18   : > { %1400 = vmatprep.subr.bf16.mxu1 (!%p376_p9), %v1399_v17  ;;  %v439_v29 = vld [vmem:[%s1976_s2 + $0x20] sm:$0xff] (!%p376_p9)  ;;  %v1403_v30 = vpack.c.bf16 (!%p376_p9), %v562_v28, %v561_v27  ;;  %v440_v31 = vld [vmem:[%s1976_s2 + $0x28] sm:$0xff] (!%p376_p9)  ;;  %v458_v36 = vld [vmem:[%s1976_s2 + $0xb8] sm:$0xff] (!%p376_p9) }
  0x19   : > { %v545_v32 = vld [vmem:[%s1977_s3 + $0x20] sm:$0xff]  ;;  %v546_v33 = vld [vmem:[%s1977_s3 + $0x28] sm:$0xff]  ;;  %v1373_v34 = vpack.c.bf16 %v440_v31, %v439_v29  ;;  %v563_v37 = vld [vmem:[%s1977_s3 + $0xb0] sm:$0xff]  ;;  %v1375_v39 = vpack.c.bf16 %v458_v36, %v457_v35  ;;  %s1780_s20 = scalar_select %p422_p10, %s1641_s25, 1  ;;  %v1551_v36 = vmov 0.0  }
  0x1a   : > { %1370 = vmatpush3.bf16.msra.mxu0 %v1369_v21  ;;  %v1405_v38 = vpack.c.bf16 %v546_v33, %v545_v32  ;;  %v564_v40 = vld [vmem:[%s1977_s3 + $0xb8] sm:$0xff]  ;;  %v441_v41 = vld [vmem:[%s1976_s2 + $0x30] sm:$0xff]  ;;  %v459_v46 = vld [vmem:[%s1976_s2 + $0xc0] sm:$0xff]  ;;  %s1554_s25 = smov [#allocation2]  }
  0x1b   : > { %1402 = vmatpush3.bf16.msra.mxu1 %v1401_v25  ;;  %1372 = vmatprep.subr.bf16.mxu0 %v1371_v26  ;;  %v442_v42 = vld [vmem:[%s1976_s2 + $0x38] sm:$0xff]  ;;  %v1407_v43 = vpack.c.bf16 %v564_v40, %v563_v37  ;;  %v547_v44 = vld [vmem:[%s1977_s3 + $0x30] sm:$0xff]  ;;  %v460_v47 = vld [vmem:[%s1976_s2 + $0xc8] sm:$0xff]  ;;  %s1262_s29 = sshll.u32 %s1780_s20, 3  ;;  %s1167_s20 = sshll.u32 %s421_s26, 4  ;;  %s1934_s20 = int_to_ptr.vmem [resolvable:$true] %s1167_s20 }
  0x1c   : > { %1404 = vmatprep.subr.bf16.mxu1 %v1403_v30  ;;  %v548_v45 = vld [vmem:[%s1977_s3 + $0x38] sm:$0xff]  ;;  %v565_v48 = vld [vmem:[%s1977_s3 + $0xc0] sm:$0xff]  ;;  %v566_v49 = vld [vmem:[%s1977_s3 + $0xc8] sm:$0xff]  ;;  %v1377_v50 = vpack.c.bf16 %v442_v42, %v441_v41  ;;  %v1379_v52 = vpack.c.bf16 %v460_v47, %v459_v46  ;;  %s426_s18 = scalar_lea.vmem %s1974_s0, %s1262_s29  ;;  %s431_s14 = scalar_lea.vmem %s1975_s1, %s1262_s29 }
  0x1d   : > { %v1409_v51 = vpack.c.bf16 %v548_v45, %v547_v44  ;;  %v443_v53 = vld [vmem:[%s1976_s2 + $0x40] sm:$0xff]  ;;  %v444_v54 = vld [vmem:[%s1976_s2 + $0x48] sm:$0xff]  ;;  %v1411_v56 = vpack.c.bf16 %v566_v49, %v565_v48  ;;  %v461_v58 = vld [vmem:[%s1976_s2 + $0xd0] sm:$0xff]  ;;  %s1487_s23 = scalar_lea.vmem %s1934_s20, 128  ;;  %s1491_s27 = sshll.u32 %s1554_s25, 4  ;;  %s1492_s27 = int_to_ptr.vmem [resolvable:$false] %s1491_s27 }
  0x1e   : > { %1374 = vmatpush3.bf16.msra.mxu0 %v1373_v34  ;;  %v549_v55 = vld [vmem:[%s1977_s3 + $0x40] sm:$0xff]  ;;  %v550_v57 = vld [vmem:[%s1977_s3 + $0x48] sm:$0xff]  ;;  %v462_v59 = vld [vmem:[%s1976_s2 + $0xd8] sm:$0xff]  ;;  %v1381_v62 = vpack.c.bf16 %v444_v54, %v443_v53  ;;  %p1488_p11 = scmp.ne.s32.totalorder %s1934_s20, %s1487_s23  ;;  %s1493_s15 = scalar_lea.vmem %s1492_s27, 256 }
  0x1f   : > { %1406 = vmatpush3.bf16.msra.mxu1 %v1405_v38  ;;  %1376 = vmatprep.subr.bf16.mxu0 %v1375_v39  ;;  %v567_v60 = vld [vmem:[%s1977_s3 + $0xd0] sm:$0xff]  ;;  %v568_v61 = vld [vmem:[%s1977_s3 + $0xd8] sm:$0xff]  ;;  %v1413_v63 = vpack.c.bf16 %v550_v57, %v549_v55  ;;  %v1383_v0 = vpack.c.bf16 %v462_v59, %v461_v58  ;;  %v463_v6 = vld [vmem:[%s1976_s2 + $0xe0] sm:$0xff]  ;;  %v1553_v38 = vmov 0   ;;  %p1494_p0 = scmp.lt.s32.totalorder %s1934_s20, %s1492_s27  ;;  %p1495_p1 = scmp.lt.s32.totalorder %s1493_s15, %s1487_s23 }
  0x20   : > { %1408 = vmatprep.subr.bf16.mxu1 %v1407_v43  ;;  %v445_v1 = vld [vmem:[%s1976_s2 + $0x50] sm:$0xff]  ;;  %v446_v2 = vld [vmem:[%s1976_s2 + $0x58] sm:$0xff]  ;;  %v1415_v4 = vpack.c.bf16 %v568_v61, %v567_v60  ;;  %v464_v7 = vld [vmem:[%s1976_s2 + $0xe8] sm:$0xff]  ;;  %1477 = vset.pattern.permute.xlu0 %v1553_v38  ;;  %p1489_p12 = pnand %p1488_p11, %p1658_p5 }
  0x21   : > { %v551_v3 = vld [vmem:[%s1977_s3 + $0x50] sm:$0xff]  ;;  %v552_v5 = vld [vmem:[%s1977_s3 + $0x58] sm:$0xff]  ;;  %v569_v8 = vld [vmem:[%s1977_s3 + $0xe0] sm:$0xff]  ;;  %v1385_v10 = vpack.c.bf16 %v446_v2, %v445_v1  ;;  %v1387_v14 = vpack.c.bf16 %v464_v7, %v463_v6  ;;  %1478 = vset.pattern.permute.xlu1 %v1553_v38  ;;  %p1496_p2 = por %p1495_p1, %p1494_p0 }
  0x22   : > { %1378 = vmatpush3.bf16.msra.mxu0 %v1377_v50  ;;  %v570_v9 = vld [vmem:[%s1977_s3 + $0xe8] sm:$0xff]  ;;  %v447_v11 = vld [vmem:[%s1976_s2 + $0x60] sm:$0xff]  ;;  %v1417_v13 = vpack.c.bf16 %v552_v5, %v551_v3  ;;  %v465_v20 = vld [vmem:[%s1976_s2 + $0xf0] sm:$0xff]  ;;  %p1490_p13 = pneg %p1489_p12 }
  0x23   : > { %1410 = vmatpush3.bf16.msra.mxu1 %v1409_v51  ;;  %1380 = vmatprep.subr.bf16.mxu0 %v1379_v52  ;;  %v448_v12 = vld [vmem:[%s1976_s2 + $0x68] sm:$0xff]  ;;  %v553_v15 = vld [vmem:[%s1977_s3 + $0x60] sm:$0xff]  ;;  %v1419_v18 = vpack.c.bf16 %v570_v9, %v569_v8  ;;  %v466_v21 = vld [vmem:[%s1976_s2 + $0xf8] sm:$0xff] }
  0x24   : > { %1412 = vmatprep.subr.bf16.mxu1 %v1411_v56  ;;  %v1846_v16 = vld [vmem:[%s426_s18] sm:$0xff]  ;;  %v554_v19 = vld [vmem:[%s1977_s3 + $0x68] sm:$0xff]  ;;  %v571_v23 = vld [vmem:[%s1977_s3 + $0xf0] sm:$0xff]  ;;  %v1389_v25 = vpack.c.bf16 %v448_v12, %v447_v11  ;;  %v1391_v28 = vpack.c.bf16 %v466_v21, %v465_v20  ;;  %p1497_p3 = pnand %p1496_p2, %p1490_p13 }
  0x25   : > { %v1848_v17 = vld [vmem:[%s431_s14] sm:$0xff]  ;;  %v572_v24 = vld [vmem:[%s1977_s3 + $0xf8] sm:$0xff]  ;;  %v1421_v27 = vpack.c.bf16 %v554_v19, %v553_v15  ;;  %v449_v29 = vld [vmem:[%s1976_s2 + $0x70] sm:$0xff] }
  0x26   : > { %1382 = vmatpush3.bf16.msra.mxu0 %v1381_v62  ;;  %v434_v22 = vadd.f32 %v1848_v17, %v1846_v16  ;;  %v450_v30 = vld [vmem:[%s1976_s2 + $0x78] sm:$0xff]  ;;  %v1423_v31 = vpack.c.bf16 %v572_v24, %v571_v23  ;;  %v555_v32 = vld [vmem:[%s1977_s3 + $0x70] sm:$0xff]  ;;  %v645_v37 = vld [vmem:[%s1981_s7] sm:$0xff] }
  0x27   : > { %1414 = vmatpush3.bf16.msra.mxu1 %v1413_v63  ;;  %1384 = vmatprep.subr.bf16.mxu0 %v1383_v0  ;;  %v556_v33 = vld [vmem:[%s1977_s3 + $0x78] sm:$0xff]  ;;  %v1393_v34 = vpack.c.bf16 %v450_v30, %v449_v29  ;;  %v813_v39 = vld [vmem:[%s1983_s9] sm:$0xf]  ;;  %v986_v5 = vld [vmem:[%s1978_s4 + $0x8] sm:$0xff] }
  0x28   : > { %1416 = vmatprep.subr.bf16.mxu1 %v1415_v4  ;;  %v468_v26 = vcombine.high %v434_v22, %v434_v22  ;;  %v1425_v35 = vpack.c.bf16 %v556_v33, %v555_v32  ;;  %648 = vperm.xlu0 %1477, %v645_v37   ;;  %v644_v47 = vld [vmem:[%s1980_s6] sm:$0xff]  ;;  %v988_v6 = vld [vmem:[%s1978_s4 + $0x18] sm:$0xff]  ;;  %v1065_v7 = vld [vmem:[%s1979_s5 + $0x8] sm:$0xff] }
  0x29   : > { %v900_v49 = vld [vmem:[%s1985_s11] sm:$0xf]  ;;  %v1427_v8 = vpack.c.bf16 %v988_v6, %v986_v5  ;;  %v1067_v9 = vld [vmem:[%s1979_s5 + $0x18] sm:$0xff]  ;;  %v987_v11 = vld [vmem:[%s1978_s4 + $0x10] sm:$0xff] }
  0x2a   : > { %1386 = vmatpush3.bf16.msra.mxu0 %v1385_v10  ;;  %534 = vmatprep.mubr.f32.mxu0 %v468_v26  ;;  %v812_v2 = vld [vmem:[%s1982_s8] sm:$0xf]  ;;  %v1431_v12 = vpack.c.bf16 %v1067_v9, %v1065_v7  ;;  %v1066_v15 = vld [vmem:[%s1979_s5 + $0x10] sm:$0xff] }
  0x2b   : > { %1418 = vmatpush3.bf16.msra.mxu1 %v1417_v13  ;;  %1388 = vmatprep.subr.bf16.mxu0 %v1387_v14  ;;  %v899_v4 = vld [vmem:[%s1984_s10] sm:$0xf] }
  0x2c   : > { %1420 = vmatprep.subr.bf16.mxu1 %v1419_v18  ;;  %637 = vmatprep.mubr.f32.mxu1 %v468_v26  ;;  %v985_v10 = vld [vmem:[%s1978_s4] sm:$0xff] }
  0x2d   : > { %816 = vperm.xlu0 %1477, %v813_v39   ;;  %903 = vperm.xlu1 %1478, %v900_v49   ;;  %v1429_v13 = vpack.c.bf16 %v987_v11, %v985_v10  ;;  %v1064_v14 = vld [vmem:[%s1979_s5] sm:$0xff] }
  0x2e   : > { %1390 = vmatpush3.bf16.msra.mxu0 %v1389_v25  ;;  %v1433_v18 = vpack.c.bf16 %v1066_v15, %v1064_v14 }
  0x2f   : > { %1422 = vmatpush3.bf16.msra.mxu1 %v1421_v27  ;;  %1392 = vmatprep.subr.bf16.mxu0 %v1391_v28 }
  0x30   : > { %1424 = vmatprep.subr.bf16.mxu1 %v1423_v31 }
  0x32   : > { %1394 = vmatpush3.bf16.msra.mxu0 %v1393_v34 }
  0x33   : > { %1426 = vmatpush3.bf16.msra.mxu1 %v1425_v35  ;;  %1343 = vmatprep.subr.mxu0 %v1551_v36 }
  0x34   : > { %1348 = vmatprep.subr.mxu1 %v1551_v36 }
  0x35   : > { %535 = vmatmul.mubr.f32.vlgmr.msra.gmra.mrb[0].mxu0 %v434_v22 }
  0x36   : > { %638 = vmatmul.mubr.f32.vlgmr.msra.gmra.mrb[0].mxu1 %v434_v22  ;;  %1345 = vmatprep.mubr.msk.f32.mxu0 %vm1552_vm0, %v1551_v36 }
  0x37   : > { %1350 = vmatprep.mubr.msk.f32.mxu1 %vm1552_vm0, %v1551_v36 }
  0xa7   : > { %v649_v50 = vpop.permute.xlu0 %648 }
  0xac   : > { %v904_v19 = vpop.permute.xlu1 %903  ;;  %v817_v20 = vpop.permute.xlu0 %816 }
 0x108   : > { %v1297_v40 = vpop.f32.mrb[0].mxu0 }
 0x109   : > { %v1332_v41 = vpop.f32.mrb[0].mxu1  ;;  %v1298_v42 = vpop.f32.mrb[1].mxu0 }
 0x10a   : > { %v1299_v43 = vadd.f32 %v1298_v42, %v1297_v40  ;;  %v1333_v44 = vpop.f32.mrb[1].mxu1 }
 0x10b   : > { %v1334_v45 = vadd.f32 %v1333_v44, %v1332_v41 }
 0x10c   : > { %v540_v46 = vmul.f32 0.0625, %v1299_v43 }
 0x10d   : > { %v643_v48 = vmul.f32 0.0625, %v1334_v45 }
 0x10e   : > { %1344 = vmatpush3.msk.msra.mxu0 %vm655_vm1, %v540_v46 }
 0x10f   : > { %1349 = vmatpush3.msk.msra.mxu1 %vm655_vm1, %v643_v48  ;;  %1346 = vmatmul.mubr.msk.f32.vlgmr.msra.gmra.mrb[2].mxu0 %vm651_vm2, %v644_v47 }
 0x110   : > { %1351 = vmatmul.mubr.msk.f32.vlgmr.msra.gmra.mrb[2].mxu1 %vm651_vm2, %v644_v47  ;;  %1353 = vmatprep.subr.mxu0 %v1551_v36 }
 0x111   : > { %1358 = vmatprep.subr.mxu1 %v1551_v36  ;;  %1355 = vmatprep.mubr.msk.f32.mxu0 %vm1552_vm0, %v1551_v36 }
 0x112   : > { %1360 = vmatprep.mubr.msk.f32.mxu1 %vm1552_vm0, %v1551_v36 }
 0x1e2   : > { %v725_v51 = vpop.f32.mrb[2].mxu0 }
 0x1e3   : > { %v726_v52 = vadd.f32 %v725_v51, %v649_v50  ;;  %v803_v53 = vpop.f32.mrb[2].mxu1  ;;  %v1347_v54 = vpop.f32.mrb[3].mxu0 }
 0x1e4   : > { %v804_v55 = vadd.f32 %v803_v53, %v649_v50  ;;  %v1352_v56 = vpop.f32.mrb[3].mxu1 }
 0x1e5   : > { %v729_v57 = vadd.f32 3.0, %v726_v52 }
 0x1e6   : > { %v807_v58 = vadd.f32 3.0, %v804_v55 }
 0x1e7   : > { %v730_v59 = vmax.f32 %v729_v57, 0.0 }
 0x1e8   : > { %v808_v60 = vmax.f32 %v807_v58, 0.0 }
 0x1e9   : > { %v731_v61 = vmin.f32 %v730_v59, 6.0 }
 0x1ea   : > { %v809_v62 = vmin.f32 %v808_v60, 6.0 }
 0x1eb   : > { %v732_v63 = vmul.f32 0.16666667, %v731_v61 }
 0x1ec   : > { %v810_v0 = vmul.f32 0.16666667, %v809_v62 }
 0x1ed   : > { %v733_v1 = vmul.f32 %v732_v63, %v726_v52 }
 0x1ee   : > { %v811_v3 = vmul.f32 %v810_v0, %v804_v55 }
 0x1ef   : > { %1354 = vmatpush3.msra.mxu0 %v733_v1 }
 0x1f0   : > { %1359 = vmatpush3.msra.mxu1 %v811_v3  ;;  %1356 = vmatmul.mubr.msk.f32.vlgmr.msra.gmra.mrb[4].mxu0 %vm819_vm3, %v812_v2 }
 0x1f1   : > { %1361 = vmatmul.mubr.msk.f32.vlgmr.msra.gmra.mrb[4].mxu1 %vm819_vm3, %v899_v4  ;;  %1057 = vmatprep.mubr.f32.mxu0 %v1551_v36 }
 0x1f2   : > { %1135 = vmatprep.mubr.f32.mxu1 %v1551_v36  ;;  %1428 = vmatprep.subr.bf16.mxu0 %v1427_v8 }
 0x1f3   : > { %1432 = vmatprep.subr.bf16.mxu1 %v1431_v12  ;;  %1430 = vmatpush1.bf16.msra.mxu0 %v1429_v13 }
 0x1f4   : > { %1434 = vmatpush1.bf16.msra.mxu1 %v1433_v18 }
 0x2c3   : > { %v889_v21 = vpop.f32.mrb[4].mxu0 }
 0x2c4   : > { %v890_v22 = vadd.f32 %v889_v21, %v817_v20  ;;  %v975_v23 = vpop.f32.mrb[4].mxu1  ;;  %v1357_v24 = vpop.f32.mrb[5].mxu0 }
 0x2c5   : > { %v976_v25 = vadd.f32 %v975_v23, %v904_v19  ;;  %v1362_v26 = vpop.f32.mrb[5].mxu1 }
 0x2c6   : > { %v1252_v27 = vmul.f32 -1.442695, %v890_v22 }
 0x2c7   : > { %v1254_v28 = vmul.f32 -1.442695, %v976_v25 }
 0x2c8   : > { %1479 = vpow2.f32 %v1252_v27 }
 0x2c9   : > { %1481 = vpow2.f32 %v1254_v28 }
 0x2d2   : > { %v1480_v29 = vpop.eup %1479 }
 0x2d3   : > { %v1482_v30 = vpop.eup %1481  ;;  %v896_v31 = vadd.f32 1.0, %v1480_v29 }
 0x2d4   : > { %v982_v32 = vadd.f32 1.0, %v1482_v30 }
 0x2d5   : > { %1483 = vrcp.f32 %v896_v31 }
 0x2d6   : > { %1485 = vrcp.f32 %v982_v32 }
 0x2df   : > { %v1484_v33 = vpop.eup %1483 }
 0x2e0   : > { %v1486_v34 = vpop.eup %1485  ;;  %1255 = vmatmul.mubr.msk.f32.vlgmr.msra.gmra.mrb[6].mxu0 %vm989_vm4, %v1484_v33 }
 0x2e1   : > { %1256 = vmatmul.mubr.msk.f32.vlgmr.msra.gmra.mrb[6].mxu1 %vm989_vm4, %v1486_v34 }
 0x3b3   : > { %v1059_v35 = vpop.f32.mrb[6].mxu0 }
 0x3b4   : > { %v1137_v36 = vpop.f32.mrb[6].mxu1  ;;  %v1061_v37 = vpop.f32.mrb[7].mxu0 }
 0x3b5   : > { %v1142_v38 = vmul.f32 %v1137_v36, %v1059_v35  ;;  %v1139_v39 = vpop.f32.mrb[7].mxu1 }
 0x3b6   : > { %v1143_v40 = vmul.f32 %v1139_v39, %v1061_v37 }
 0x3b8   : > { %v1146_v41 = vcombine.low %v1142_v38, %v1143_v40 }
 0x3ba   : > { %v1148_v42 = vmul.f32 %v1146_v41, %v1846_v16 }
 0x3bc   : > { %v1149_v43 = vadd.f32 %v1148_v42, %v1848_v17 }
 0x3be   : > { %v1150_v44 = vmul.f32 2.0, %v1149_v43 }
 0x3c0   : > { %1151 = vst [vmem:[%s421_s26] sm:$0xff] %v1150_v44 }
 0x3c1   : > { %1500 = shalt.err (!%p1497_p3)
}
 0x3c2   : > { %s1501_s21 = scalar_lea.hbm %s1932_s30, 128  ;;  %s1505_s16 = scalar_lea.hbm %s1986_s12, 256 }
 0x3c3   : > { %p1502_p4 = scmp.ne.s32.totalorder %s1932_s30, %s1501_s21  ;;  %p1506_p9 = scmp.lt.u32.totalorder %s1932_s30, %s1986_s12 }
 0x3c4   : > { %p1507_p10 = scmp.lt.u32.totalorder %s1505_s16, %s1501_s21  ;;  %p1509_p12 = scmp.lt.u32.totalorder %s1501_s21, %s1932_s30 }
 0x3c5   : > { %p1503_p7 = pnand %p1502_p4, %p1658_p5 }
 0x3c6   : > { %p1508_p11 = por %p1507_p10, %p1506_p9 }
 0x3c7   : > { %p1504_p8 = pneg %p1503_p7 }
 0x3c8   : > { %p1510_p13 = por %p1509_p12, %p1508_p11 }
 0x3ca   : > { %p1511_p0 = pnand %p1510_p13, %p1504_p8 }
 0x3cc   : > { %1514 = shalt.err (!%p1511_p0)
}
 0x3cd   : > { %1435 = dma.vmem_to_hbm [thread:$0]  (%p1658_p5), %s1934_s20, 128, %s1932_s30, %s1153_s28  }
 0x3ce PF: > { %s2001_s26 = sld [smem:[#allocation7_spill]]  ;;  %s2002_s18 = sld [smem:[#allocation5_spill]] }
 0x3d4   : > { %p1441_p1 = scmp.ge.s32.totalorder %s2001_s26, 2  ;;  %s1179_s23 = sand.u32 1, %s2002_s18  }
 0x3d5   : > { %s1180_s25 = scalar_lea.sflag [#allocation3], %s1179_s23 }
 0x3d6   : > { %p1438_p2 = pnand %p1441_p1, %p1662_p6 }
 0x3d8   : > { %1532 = dma.done.wait (!%p1438_p2), %s1180_s25, 128  }
 0x3d9   : > { %1534 = vsyncadd (!%p1438_p2), %s1180_s25, 4294967168  ;;  %s2004_s24 = sld [smem:[#allocation8_spill]]  ;;  %s2005_s27 = sld [smem:[#allocation6_spill]] }
 0x3da   : > { %s2006_s23 = sld [smem:[#allocation9_spill]]  ;;  %s2007_s21 = smov %s1541_s22 }
 0x3df   : > { %p22_p3 = scmp.ge.s32.totalorder %s2004_s24, 4   ;;  %s2008_s22 = smov %s2005_s27 }
 0x3e1   :  { %24 = sbr.rel (!%p22_p3) target bundleno = 3 (0x3), region = 106 }
 0x3e8   :  { %1185 = vsyncpa [#allocation3], 1 }
 0x3e9   :  { %1187 = vsyncpa [#allocation3 + $0x1], 1 }

</bundles_post_ra>
